<compile_context>
chip_gen: v7x
topology: tpu7x:2x2x1
jax: 0.10.0
libtpu: 0.0.40
codegen_flags: <defaults>
</compile_context>

<pallas_src>
import numpy as np

import jax
import jax.numpy as jnp
from jax import lax
from jax.experimental import pallas as pl
from jax.experimental.pallas import tpu as pltpu

_LANE = 128
_MAX_TILE_ROWS = 2048                      # 2048 x 128 x 4 B = 1 MiB / buffer
_MAX_BLK_IMGS = 64                         # images per feature-kernel step
_VMEM_LIMIT = 32 * 1024 * 1024             # explicit scoped-VMEM limit (all gens)

LAMBDA_REG = 0.1
SEMANTIC_WEIGHT = 1.0
ABSTRACTION_WEIGHT = 0.5
CONSISTENCY_WEIGHT = 0.3


# --------------------------------------------------------------------------
# helpers
# --------------------------------------------------------------------------
def _adaptive_avg_matrix(out_size: int, in_size: int) -> np.ndarray:
    """(out, in) matrix reproducing F.adaptive_avg_pool window averaging."""
    m = np.zeros((out_size, in_size), np.float32)
    for i in range(out_size):
        s = (i * in_size) // out_size
        e = -(-((i + 1) * in_size) // out_size)        # ceil((i+1)*in/out)
        m[i, s:e] = 1.0 / float(e - s)
    return m


def _lane_slab(x: jnp.ndarray):
    """Lane-dense (rows, 128) view of x.  Zero-copy when size % 128 == 0."""
    p = int(x.size)
    rows = -(-p // _LANE)
    flat = x.reshape(-1)
    if rows * _LANE != p:
        # TODO(synk): only the sub-128 tail needs zeros, but jnp.pad still
        # copies; tensors with size % 128 == 0 take the zero-copy path.
        flat = jnp.pad(flat, (0, rows * _LANE - p))
    return flat.reshape(rows, _LANE), rows


# --------------------------------------------------------------------------
# kernel 1: all abstraction levels fused (L1 + weighted squared diff sums)
# --------------------------------------------------------------------------
def _make_abs_pairs_kernel(num_levels: int, rows: int, tile_rows: int):
    ragged = (rows % tile_rows) != 0

    def kernel(*args):
        a_refs = args[:num_levels]
        out_ref = args[num_levels]                     # SMEM (1, 2)
        acc_l1 = args[num_levels + 1]                  # VMEM (1, 128)
        acc_wsq = args[num_levels + 2]                 # VMEM (1, 128)
        r = pl.program_id(0)

        @pl.when(r == 0)
        def _init():
            acc_l1[...] = jnp.zeros_like(acc_l1)
            acc_wsq[...] = jnp.zeros_like(acc_wsq)

        if ragged:
            valid = rows - r * tile_rows
            row_ids = lax.broadcasted_iota(jnp.int32, (tile_rows, _LANE), 0)
            mask = row_ids < valid

        l1_part = jnp.zeros((1, _LANE), jnp.float32)
        wsq_part = jnp.zeros((1, _LANE), jnp.float32)
        prev = a_refs[0][...].astype(jnp.float32)
        for lvl in range(1, num_levels):               # static unroll, L small
            cur = a_refs[lvl][...].astype(jnp.float32)
            d = cur - prev
            if ragged:
                d = jnp.where(mask, d, 0.0)
            l1_part = l1_part + jnp.sum(jnp.abs(d), axis=0, keepdims=True)
            # AbstractionLoss weights pair (lvl-1) by lvl / num_levels;
            # the integer factor is folded here, /num_levels in the wrapper.
            wsq_part = wsq_part + float(lvl) * jnp.sum(d * d, axis=0,
                                                       keepdims=True)
            prev = cur

        acc_l1[...] += l1_part
        acc_wsq[...] += wsq_part

        @pl.when(r == pl.num_programs(0) - 1)
        def _final():
            out_ref[0, 0] = jnp.sum(acc_l1[...])
            out_ref[0, 1] = jnp.sum(acc_wsq[...])

    return kernel


def _abs_pair_sums(abstractions):
    """Return (sum_p |a_p - a_{p+1}|, sum_p (p+1) * (a_p - a_{p+1})^2)."""
    num_levels = len(abstractions)
    shape0 = abstractions[0].shape
    for a in abstractions[1:]:
        # identical shapes => identical tail padding => d == 0 in the pad.
        assert a.shape == shape0, "all abstraction levels must share a shape"

    slabs = []
    rows = None
    for a in abstractions:
        s, rows = _lane_slab(a)
        slabs.append(s)
    tile_rows = min(rows, _MAX_TILE_ROWS)
    grid = (pl.cdiv(rows, tile_rows),)

    out = pl.pallas_call(
        _make_abs_pairs_kernel(num_levels, rows, tile_rows),
        grid=grid,
        in_specs=[pl.BlockSpec((tile_rows, _LANE), lambda r: (r, 0))
                  for _ in range(num_levels)],
        out_specs=pl.BlockSpec(memory_space=pltpu.MemorySpace.SMEM),
        out_shape=jax.ShapeDtypeStruct((1, 2), jnp.float32),
        scratch_shapes=[pltpu.VMEM((1, _LANE), jnp.float32),
                        pltpu.VMEM((1, _LANE), jnp.float32)],
        compiler_params=pltpu.CompilerParams(
            dimension_semantics=("arbitrary",),         # shared accumulator
            vmem_limit_bytes=_VMEM_LIMIT),
    )(*slabs)
    return out[0, 0], out[0, 1]


# --------------------------------------------------------------------------
# kernel 2: all feature levels fused, grid over blocks of B*C images
#   outputs (1, 2L-1):  [pooled-MSE sums per pair | -log(var+eps) sums per level]
# --------------------------------------------------------------------------
def _make_feature_kernel(num_levels: int, spatial_sizes, n_imgs: int, nblk: int):
    num_pairs = num_levels - 1
    ragged = (n_imgs % nblk) != 0

    def kernel(*args):
        f_refs = args[:num_levels]
        m_refs = args[num_levels:num_levels + num_pairs]
        out_ref = args[num_levels + num_pairs]          # SMEM (1, 2L-1)
        n = pl.program_id(0)

        if ragged:
            valid = n_imgs - n * nblk
            row_ids = lax.broadcasted_iota(jnp.int32, (nblk, 1), 0)
            rmask = row_ids < valid

        vals = [None] * (num_pairs + num_levels)
        prev = None
        for l in range(num_levels):                     # rolling prev/cur pair
            cur = f_refs[l][...].astype(jnp.float32)    # (nblk, H*W)

            # abstraction term: -log(unbiased spatial variance + 1e-6) per image
            cnt = float(spatial_sizes[l])
            mean = jnp.sum(cur, axis=1, keepdims=True) * (1.0 / cnt)
            cen = cur - mean
            var = jnp.sum(cen * cen, axis=1, keepdims=True) * (1.0 / (cnt - 1.0))
            nlv = -jnp.log(var + 1e-6)                  # (nblk, 1)
            if ragged:
                nlv = jnp.where(rmask, nlv, 0.0)
            vals[num_pairs + l] = jnp.sum(nlv)

            # consistency term: MSE(adaptive_avg_pool2d(prev), cur) partial sums
            if l > 0:
                pooled = jnp.dot(prev, m_refs[l - 1][...],
                                 preferred_element_type=jnp.float32)
                d = pooled - cur
                d2 = jnp.sum(d * d, axis=1, keepdims=True)   # (nblk, 1)
                if ragged:
                    d2 = jnp.where(rmask, d2, 0.0)
                vals[l - 1] = jnp.sum(d2)
            prev = cur

        @pl.when(n == 0)
        def _init():
            for k in range(len(vals)):
                out_ref[0, k] = vals[k]

        @pl.when(n != 0)
        def _acc():
            for k in range(len(vals)):
                out_ref[0, k] += vals[k]

    return kernel


def _feature_terms(features):
    """Fused pooled-MSE sums (per pair) and -log(var) sums (per level)."""
    num_levels = len(features)
    num_pairs = num_levels - 1
    B, C = features[0].shape[:2]
    n_imgs = B * C

    flats = []
    for f in features:
        assert f.shape[0] == B and f.shape[1] == C
        assert f.shape[2] * f.shape[3] > 1, "1x1 maps make var(ddof=1) undefined"
        flats.append(f.reshape(n_imgs, f.shape[2] * f.shape[3]))  # lane-dense

    mats = []
    for p in range(num_pairs):
        hc, wc = features[p].shape[2], features[p].shape[3]
        hn, wn = features[p + 1].shape[2], features[p + 1].shape[3]
        ph = _adaptive_avg_matrix(hn, hc)               # (Hn, Hc)
        pw = _adaptive_avg_matrix(wn, wc)               # (Wn, Wc)
        # shared flattened pooling matrix (Hc*Wc, Hn*Wn) -- per pair, VMEM
        # resident, shared across all images (no block-diag over the batch).
        mats.append(jnp.asarray(np.kron(ph, pw).T))

    spatial = [int(f.shape[2] * f.shape[3]) for f in features]

    # block several images per step; keep the largest level's block <= ~1 MiB
    max_hw = max(spatial)
    cap = max(8, min(_MAX_BLK_IMGS, (1 << 20) // (max_hw * 4)))
    cap = (cap // 8) * 8
    nblk = n_imgs if n_imgs <= cap else cap
    grid = (pl.cdiv(n_imgs, nblk),)

    in_specs = []
    for f2 in flats:
        hw = f2.shape[1]
        in_specs.append(pl.BlockSpec((nblk, hw), lambda n: (n, 0)))
    for m in mats:                                      # resident constants
        in_specs.append(pl.BlockSpec(m.shape, lambda n: (0, 0)))

    out = pl.pallas_call(
        _make_feature_kernel(num_levels, spatial, n_imgs, nblk),
        grid=grid,
        in_specs=in_specs,
        out_specs=pl.BlockSpec(memory_space=pltpu.MemorySpace.SMEM),
        out_shape=jax.ShapeDtypeStruct((1, 2 * num_levels - 1), jnp.float32),
        compiler_params=pltpu.CompilerParams(
            dimension_semantics=("arbitrary",),          # shared accumulator
            vmem_limit_bytes=_VMEM_LIMIT),
    )(*flats, *mats)

    mse_sums = [out[0, p] for p in range(num_pairs)]
    nlv_sums = [out[0, num_pairs + l] for l in range(num_levels)]
    return mse_sums, nlv_sums, n_imgs


# --------------------------------------------------------------------------
# loss wrappers (forward semantics of the PyTorch module)
# --------------------------------------------------------------------------
def _loss_terms(abstractions, features):
    # Both kernels are needed by BOTH sub-losses (each reads abstractions and
    # features once), so nothing is wasted when the standalone entry points
    # are used; combined_loss shares a single call to this function.
    L = len(abstractions)
    assert L >= 2 and len(features) == L
    n_abs = int(abstractions[0].size)
    l1_tot, wsq_tot = _abs_pair_sums(abstractions)
    mse_sums, nlv_sums, n_imgs = _feature_terms(features)
    return l1_tot, wsq_tot, mse_sums, nlv_sums, n_imgs, n_abs


def consistency_loss(abstractions, features, lambda_reg=LAMBDA_REG):
    L = len(abstractions)
    l1_tot, _, mse_sums, _, n_imgs, n_abs = _loss_terms(abstractions, features)
    mse_total = jnp.float32(0.0)
    for p in range(L - 1):
        hn, wn = features[p + 1].shape[2], features[p + 1].shape[3]
        mse_total = mse_total + mse_sums[p] / float(n_imgs * hn * wn)
    return (l1_tot / float(n_abs) + lambda_reg * mse_total) / float(L - 1)


def abstraction_loss(abstractions, features):
    L = len(abstractions)
    _, wsq_tot, _, nlv_sums, n_imgs, n_abs = _loss_terms(abstractions, features)
    feat_term = sum(nlv_sums) / float(n_imgs)
    return wsq_tot / float(n_abs * L) + 0.1 * feat_term


def combined_loss(abstractions, features, *,
                  semantic_weight=SEMANTIC_WEIGHT,
                  abstraction_weight=ABSTRACTION_WEIGHT,
                  consistency_weight=CONSISTENCY_WEIGHT,
                  lambda_reg=LAMBDA_REG,
                  semantic_loss_value=None):
    """CombinedLoss.forward (both kernels run once; both sub-losses assembled)."""
    L = len(abstractions)
    l1_tot, wsq_tot, mse_sums, nlv_sums, n_imgs, n_abs = _loss_terms(
        abstractions, features)

    mse_total = jnp.float32(0.0)
    for p in range(L - 1):
        hn, wn = features[p + 1].shape[2], features[p + 1].shape[3]
        mse_total = mse_total + mse_sums[p] / float(n_imgs * hn * wn)
    cons = (l1_tot / float(n_abs) + lambda_reg * mse_total) / float(L - 1)

    abst = (wsq_tot / float(n_abs * L)
            + 0.1 * (sum(nlv_sums) / float(n_imgs)))

    total = abstraction_weight * abst + consistency_weight * cons
    # TODO(synk): SemanticLoss requires an external CLIP image encoder; accept
    # a precomputed value instead of faking the encoder.
    if semantic_loss_value is not None:
        total = total + semantic_weight * semantic_loss_value
    return total


# --------------------------------------------------------------------------
# pure-JAX references (handle non-divisible adaptive windows too)
# --------------------------------------------------------------------------
def _adaptive_avg_pool2d_ref(x, out_hw):
    oh, ow = out_hw
    H, W = x.shape[-2], x.shape[-1]
    rows = []
    for i in range(oh):
        hs, he = (i * H) // oh, -(-((i + 1) * H) // oh)
        cols = []
        for j in range(ow):
            ws, we = (j * W) // ow, -(-((j + 1) * W) // ow)
            cols.append(x[..., hs:he, ws:we].mean(axis=(-2, -1)))
        rows.append(jnp.stack(cols, axis=-1))
    return jnp.stack(rows, axis=-2)


def _consistency_ref(abstractions, features, lambda_reg=LAMBDA_REG):
    L = len(abstractions)
    total = jnp.float32(0.0)
    for p in range(L - 1):
        l1 = jnp.mean(jnp.abs(abstractions[p] - abstractions[p + 1]))
        pooled = _adaptive_avg_pool2d_ref(features[p],
                                          features[p + 1].shape[-2:])
        mse = jnp.mean((pooled - features[p + 1]) ** 2)
        total = total + l1 + lambda_reg * mse
    return total / (L - 1)


def _abstraction_ref(abstractions, features):
    L = len(abstractions)
    total = jnp.float32(0.0)
    for p in range(L - 1):
        mse = jnp.mean((abstractions[p] - abstractions[p + 1]) ** 2)
        total = total + mse * float(p + 1) / float(L)
    feat = jnp.float32(0.0)
    for f in features:
        var = jnp.var(f, axis=(2, 3), ddof=1)
        feat = feat + jnp.mean(-jnp.log(var + 1e-6))
    return total + 0.1 * feat


def _combined_ref(abstractions, features):
    return (ABSTRACTION_WEIGHT * _abstraction_ref(abstractions, features)
            + CONSISTENCY_WEIGHT * _consistency_ref(abstractions, features))


# --------------------------------------------------------------------------
if __name__ == "__main__":
    def run_case(key, abs_shapes, feat_shapes):
        ks = jax.random.split(key, len(abs_shapes) + len(feat_shapes))
        abstractions = [jax.random.normal(ks[i], s, jnp.float32)
                        for i, s in enumerate(abs_shapes)]
        features = [jax.random.normal(ks[len(abs_shapes) + i], s, jnp.float32)
                    for i, s in enumerate(feat_shapes)]

        cons = jax.block_until_ready(consistency_loss(abstractions, features))
        cons_ref = jax.block_until_ready(_consistency_ref(abstractions, features))
        assert jnp.allclose(cons, cons_ref, rtol=1e-4, atol=1e-4), (cons, cons_ref)

        abst = jax.block_until_ready(abstraction_loss(abstractions, features))
        abst_ref = jax.block_until_ready(_abstraction_ref(abstractions, features))
        assert jnp.allclose(abst, abst_ref, rtol=1e-4, atol=1e-4), (abst, abst_ref)

        total = jax.block_until_ready(combined_loss(abstractions, features))
        total_ref = jax.block_until_ready(_combined_ref(abstractions, features))
        assert jnp.allclose(total, total_ref, rtol=1e-4, atol=1e-4), (total, total_ref)

    key = jax.random.PRNGKey(0)
    k1, k2, k3 = jax.random.split(key, 3)

    # 1) small divisible case (zero-copy slab, single tile, single image block)
    run_case(k1,
             [(2, 3, 16, 16)] * 3,
             [(2, 4, 16, 16), (2, 4, 8, 8), (2, 4, 4, 4)])

    # 2) non-divisible adaptive windows + element count not a multiple of 128
    run_case(k2,
             [(2, 3, 14, 14)] * 3,
             [(2, 4, 14, 14), (2, 4, 6, 6), (2, 4, 3, 3)])

    # 3) multi-tile abstraction slab with a ragged (masked) final row tile
    run_case(k3,
             [(1, 3, 320, 320)] * 2,
             [(1, 4, 16, 16), (1, 4, 8, 8)])

    print("KERNEL_OK")
</pallas_src>

<mosaic_0001>
module attributes {stable_mosaic.version = 11 : i64} {
  func.func @kernel(%arg0: i32, %arg1: memref<12x128xf32, #tpu.memory_space<vmem>>, %arg2: memref<12x128xf32, #tpu.memory_space<vmem>>, %arg3: memref<12x128xf32, #tpu.memory_space<vmem>>, %arg4: memref<1x2xf32, #tpu.memory_space<smem>>, %arg5: memref<1x128xf32, #tpu.memory_space<vmem>>, %arg6: memref<1x128xf32, #tpu.memory_space<vmem>>) attributes {dimension_semantics = [#tpu.dimension_semantics<arbitrary>], iteration_bounds = array<i64: 1>, scalar_prefetch = 0 : i64, scratch_operands = 2 : i64, tpu.core_type = #tpu.core_type<tc>, window_params = [{transform_indices = @transform_0, window_bounds = array<i64: 12, 128>}, {transform_indices = @transform_1, window_bounds = array<i64: 12, 128>}, {transform_indices = @transform_2, window_bounds = array<i64: 12, 128>}, {transform_indices = @transform_3, window_bounds = array<i64: 1, 2>}]} {
    %c0_i32 = arith.constant 0 : i32
    %0 = arith.cmpi eq, %arg0, %c0_i32 : i32
    %1 = arith.extui %0 : i1 to i32
    %c0_i32_0 = arith.constant 0 : i32
    %2 = arith.cmpi ne, %1, %c0_i32_0 : i32
    scf.if %2 {
      %cst_23 = arith.constant 0.000000e+00 : f32
      %39 = vector.broadcast %cst_23 : f32 to vector<1x128xf32>
      %c0_24 = arith.constant 0 : index
      %c0_25 = arith.constant 0 : index
      %40 = vector.load %arg5[%c0_24, %c0_25] : memref<1x128xf32, #tpu.memory_space<vmem>>, vector<1x128xf32>
      tpu.vector_store %arg5[%c0_24, %c0_25], %39 {strides = array<i32>} : memref<1x128xf32, #tpu.memory_space<vmem>>, vector<1x128xf32>,
      %cst_26 = arith.constant 0.000000e+00 : f32
      %41 = vector.broadcast %cst_26 : f32 to vector<1x128xf32>
      %c0_27 = arith.constant 0 : index
      %c0_28 = arith.constant 0 : index
      %42 = vector.load %arg6[%c0_27, %c0_28] : memref<1x128xf32, #tpu.memory_space<vmem>>, vector<1x128xf32>
      tpu.vector_store %arg6[%c0_27, %c0_28], %41 {strides = array<i32>} : memref<1x128xf32, #tpu.memory_space<vmem>>, vector<1x128xf32>,
    } else {
    }
    %cst = arith.constant 0.000000e+00 : f32
    %3 = vector.broadcast %cst : f32 to vector<1x128xf32>
    %cst_1 = arith.constant 0.000000e+00 : f32
    %4 = vector.broadcast %cst_1 : f32 to vector<1x128xf32>
    %c0 = arith.constant 0 : index
    %c0_2 = arith.constant 0 : index
    %5 = vector.load %arg1[%c0, %c0_2] : memref<12x128xf32, #tpu.memory_space<vmem>>, vector<12x128xf32>
    %c0_3 = arith.constant 0 : index
    %c0_4 = arith.constant 0 : index
    %6 = vector.load %arg2[%c0_3, %c0_4] : memref<12x128xf32, #tpu.memory_space<vmem>>, vector<12x128xf32>
    %7 = arith.subf %6, %5 : vector<12x128xf32>
    %8 = math.absf %7 : vector<12x128xf32>
    %cst_5 = arith.constant dense<0.000000e+00> : vector<128xf32>
    %9 = vector.multi_reduction <add>, %8, %cst_5 [0] : vector<12x128xf32> to vector<128xf32>
    %10 = vector.shape_cast %9 : vector<128xf32> to vector<1x128xf32>
    %11 = arith.addf %3, %10 : vector<1x128xf32>
    %12 = arith.mulf %7, %7 : vector<12x128xf32>
    %cst_6 = arith.constant dense<0.000000e+00> : vector<128xf32>
    %13 = vector.multi_reduction <add>, %12, %cst_6 [0] : vector<12x128xf32> to vector<128xf32>
    %14 = vector.shape_cast %13 : vector<128xf32> to vector<1x128xf32>
    %cst_7 = arith.constant 1.000000e+00 : f32
    %15 = vector.broadcast %cst_7 : f32 to vector<1x128xf32>
    %16 = arith.mulf %15, %14 : vector<1x128xf32>
    %17 = arith.addf %4, %16 : vector<1x128xf32>
    %c0_8 = arith.constant 0 : index
    %c0_9 = arith.constant 0 : index
    %18 = vector.load %arg3[%c0_8, %c0_9] : memref<12x128xf32, #tpu.memory_space<vmem>>, vector<12x128xf32>
    %19 = arith.subf %18, %6 : vector<12x128xf32>
    %20 = math.absf %19 : vector<12x128xf32>
    %cst_10 = arith.constant dense<0.000000e+00> : vector<128xf32>
    %21 = vector.multi_reduction <add>, %20, %cst_10 [0] : vector<12x128xf32> to vector<128xf32>
    %22 = vector.shape_cast %21 : vector<128xf32> to vector<1x128xf32>
    %23 = arith.addf %11, %22 : vector<1x128xf32>
    %24 = arith.mulf %19, %19 : vector<12x128xf32>
    %cst_11 = arith.constant dense<0.000000e+00> : vector<128xf32>
    %25 = vector.multi_reduction <add>, %24, %cst_11 [0] : vector<12x128xf32> to vector<128xf32>
    %26 = vector.shape_cast %25 : vector<128xf32> to vector<1x128xf32>
    %cst_12 = arith.constant 2.000000e+00 : f32
    %27 = vector.broadcast %cst_12 : f32 to vector<1x128xf32>
    %28 = arith.mulf %27, %26 : vector<1x128xf32>
    %29 = arith.addf %17, %28 : vector<1x128xf32>
    %c0_13 = arith.constant 0 : index
    %c0_14 = arith.constant 0 : index
    %30 = vector.load %arg5[%c0_13, %c0_14] : memref<1x128xf32, #tpu.memory_space<vmem>>, vector<1x128xf32>
    %31 = arith.addf %30, %23 : vector<1x128xf32>
    %c0_15 = arith.constant 0 : index
    %c0_16 = arith.constant 0 : index
    %32 = vector.load %arg5[%c0_15, %c0_16] : memref<1x128xf32, #tpu.memory_space<vmem>>, vector<1x128xf32>
    tpu.vector_store %arg5[%c0_15, %c0_16], %31 {strides = array<i32>} : memref<1x128xf32, #tpu.memory_space<vmem>>, vector<1x128xf32>,
    %c0_17 = arith.constant 0 : index
    %c0_18 = arith.constant 0 : index
    %33 = vector.load %arg6[%c0_17, %c0_18] : memref<1x128xf32, #tpu.memory_space<vmem>>, vector<1x128xf32>
    %34 = arith.addf %33, %29 : vector<1x128xf32>
    %c0_19 = arith.constant 0 : index
    %c0_20 = arith.constant 0 : index
    %35 = vector.load %arg6[%c0_19, %c0_20] : memref<1x128xf32, #tpu.memory_space<vmem>>, vector<1x128xf32>
    tpu.vector_store %arg6[%c0_19, %c0_20], %34 {strides = array<i32>} : memref<1x128xf32, #tpu.memory_space<vmem>>, vector<1x128xf32>,
    %c0_i32_21 = arith.constant 0 : i32
    %36 = arith.cmpi eq, %arg0, %c0_i32_21 : i32
    %37 = arith.extui %36 : i1 to i32
    %c0_i32_22 = arith.constant 0 : i32
    %38 = arith.cmpi ne, %37, %c0_i32_22 : i32
    scf.if %38 {
      %c0_23 = arith.constant 0 : index
      %c0_24 = arith.constant 0 : index
      %39 = vector.load %arg5[%c0_23, %c0_24] : memref<1x128xf32, #tpu.memory_space<vmem>>, vector<1x128xf32>
      %40 = vector.shape_cast %39 : vector<1x128xf32> to vector<1x1x128xf32>
      %cst_25 = arith.constant dense<0.000000e+00> : vector<1xf32>
      %41 = vector.multi_reduction <add>, %40, %cst_25 [1, 2] : vector<1x1x128xf32> to vector<1xf32>
      %42 = vector.shape_cast %41 : vector<1xf32> to vector<1x1x1xf32>
      %43 = vector.extract %42[0, 0, 0] : f32 from vector<1x1x1xf32>
      %c0_26 = arith.constant 0 : index
      %c0_27 = arith.constant 0 : index
      %44 = memref.load %arg4[%c0_26, %c0_27] : memref<1x2xf32, #tpu.memory_space<smem>>
      memref.store %43, %arg4[%c0_26, %c0_27] : memref<1x2xf32, #tpu.memory_space<smem>>
      %c0_28 = arith.constant 0 : index
      %c0_29 = arith.constant 0 : index
      %45 = vector.load %arg6[%c0_28, %c0_29] : memref<1x128xf32, #tpu.memory_space<vmem>>, vector<1x128xf32>
      %46 = vector.shape_cast %45 : vector<1x128xf32> to vector<1x1x128xf32>
      %cst_30 = arith.constant dense<0.000000e+00> : vector<1xf32>
      %47 = vector.multi_reduction <add>, %46, %cst_30 [1, 2] : vector<1x1x128xf32> to vector<1xf32>
      %48 = vector.shape_cast %47 : vector<1xf32> to vector<1x1x1xf32>
      %49 = vector.extract %48[0, 0, 0] : f32 from vector<1x1x1xf32>
      %c0_31 = arith.constant 0 : index
      %c1 = arith.constant 1 : index
      %50 = memref.load %arg4[%c0_31, %c1] : memref<1x2xf32, #tpu.memory_space<smem>>
      memref.store %49, %arg4[%c0_31, %c1] : memref<1x2xf32, #tpu.memory_space<smem>>
    } else {
    }
    return
  }
  func.func @transform_0(%arg0: i32) -> (i32, i32) {
    %c0_i32 = arith.constant 0 : i32
    %c0_i32_0 = arith.constant 0 : i32
    return %arg0, %c0_i32 : i32, i32
  }
  func.func @transform_1(%arg0: i32) -> (i32, i32) {
    %c0_i32 = arith.constant 0 : i32
    %c0_i32_0 = arith.constant 0 : i32
    return %arg0, %c0_i32 : i32, i32
  }
  func.func @transform_2(%arg0: i32) -> (i32, i32) {
    %c0_i32 = arith.constant 0 : i32
    %c0_i32_0 = arith.constant 0 : i32
    return %arg0, %c0_i32 : i32, i32
  }
  func.func @transform_3(%arg0: i32) -> (i32, i32) {
    %c0_i32 = arith.constant 0 : i32
    %c0_i32_0 = arith.constant 0 : i32
    %c0_i32_1 = arith.constant 0 : i32
    return %c0_i32, %c0_i32_0 : i32, i32
  }
}

</mosaic_0001>

<bundles_post_ra>
// kernel: tpu_custom_call.1
= control target key start
LH: loop header
LB: loop body
LE: loop exit
PB: predicated region body
PF: predicated region fallthrough
CT: control target
= control target key end

     0   :  { %8 = vsyncpa [#allocation5], 0  ;;  %s353_s0 = inlined_call_operand.hbm [shape: f32[12,128], index: 0, kind: input, shape index: {}]   ;;  %s354_s1 = inlined_call_operand.hbm [shape: f32[12,128], index: 1, kind: input, shape index: {}]   ;;  %s355_s2 = inlined_call_operand.hbm [shape: f32[12,128], index: 2, kind: input, shape index: {}]   ;;  %s356_s3 = inlined_call_operand.hbm [shape: f32[1,2], index: 3, kind: output, shape index: {}]  }
   0x1   :  { %9 = vsyncpa [#allocation8], 0 }
   0x2   :  { %10 = vsyncpa [#allocation6], 0  ;;  %s262_s12 = smov [#allocation7]   ;;  %s263_s14 = smov [#allocation4]  }
   0x3   :  { %s28_s13 = sshll.u32 %s262_s12, 4  ;;  %s16_s15 = sshll.u32 %s263_s14, 4  ;;  %s29_s13 = int_to_ptr.vmem [resolvable:$true] %s28_s13  ;;  %s289_s15 = int_to_ptr.vmem [resolvable:$true] %s16_s15 }
   0x4   :  { %s180_s18 = scalar_lea.hbm %s354_s1, 256 }
   0x5   :  { %p181_p0 = scmp.ne.s32.totalorder %s354_s1, %s180_s18  ;;  %p184_p1 = scmp.lt.u32.totalorder %s180_s18, %s354_s1 }
   0x7   :  { %p186_p2 = pnand %p184_p1, %p181_p0 }
   0x9   :  { %189 = shalt.err (!%p186_p2)
}
   0xa   :  { %s190_s23 = scalar_lea.vmem %s29_s13, 256  ;;  %p195_p4 = scmp.lt.s32.totalorder %s29_s13, %s29_s13 }
   0xb   :  { %p191_p3 = scmp.ne.s32.totalorder %s29_s13, %s190_s23  ;;  %p196_p5 = scmp.lt.s32.totalorder %s190_s23, %s190_s23 }
   0xd   :  { %p197_p6 = por %p196_p5, %p195_p4 }
   0xf   :  { %p198_p7 = pnand %p197_p6, %p191_p3 }
  0x11   :  { %201 = shalt.err (!%p198_p7)
}
  0x12   :  { %s264_s24 = smov 128   ;;  %s265_s25 = smov 8  }
  0x13   :  { %34 = dma.hbm_to_vmem [thread:$0]  %s354_s1, 256, %s29_s13, [#allocation8], %s264_s24, %s264_s24, %s265_s25  }
  0x14   :  { %s202_s30 = scalar_lea.hbm %s353_s0, 256 }
  0x15   :  { %p203_p8 = scmp.ne.s32.totalorder %s353_s0, %s202_s30  ;;  %p206_p9 = scmp.lt.u32.totalorder %s202_s30, %s353_s0 }
  0x17   :  { %p208_p10 = pnand %p206_p9, %p203_p8 }
  0x19   :  { %211 = shalt.err (!%p208_p10)
}
  0x1a   :  { %s212_s8 = scalar_lea.vmem %s289_s15, 256  ;;  %p217_p12 = scmp.lt.s32.totalorder %s289_s15, %s289_s15 }
  0x1b   :  { %p213_p11 = scmp.ne.s32.totalorder %s289_s15, %s212_s8  ;;  %p218_p13 = scmp.lt.s32.totalorder %s212_s8, %s212_s8 }
  0x1d   :  { %p219_p0 = por %p218_p13, %p217_p12 }
  0x1f   :  { %p220_p1 = pnand %p219_p0, %p213_p11 }
  0x21   :  { %223 = shalt.err (!%p220_p1)
}
  0x22   :  { %22 = dma.hbm_to_vmem [thread:$0]  %s353_s0, 256, %s289_s15, [#allocation5], %s264_s24, %s264_s24, %s265_s25  }
  0x23   :  { %s266_s10 = smov [#allocation9]   ;;  %s224_s14 = scalar_lea.hbm %s355_s2, 256 }
  0x24   :  { %s40_s11 = sshll.u32 %s266_s10, 4  ;;  %p225_p2 = scmp.ne.s32.totalorder %s355_s2, %s224_s14  ;;  %s41_s11 = int_to_ptr.vmem [resolvable:$true] %s40_s11 }
  0x25   :  { %p228_p3 = scmp.lt.u32.totalorder %s224_s14, %s355_s2 }
  0x27   :  { %p230_p4 = pnand %p228_p3, %p225_p2 }
  0x29   :  { %233 = shalt.err (!%p230_p4)
}
  0x2a   :  { %s234_s20 = scalar_lea.vmem %s41_s11, 256  ;;  %p239_p6 = scmp.lt.s32.totalorder %s41_s11, %s41_s11 }
  0x2b   :  { %p235_p5 = scmp.ne.s32.totalorder %s41_s11, %s234_s20  ;;  %p240_p7 = scmp.lt.s32.totalorder %s234_s20, %s234_s20 }
  0x2d   :  { %p241_p8 = por %p240_p7, %p239_p6 }
  0x2f   :  { %p242_p9 = pnand %p241_p8, %p235_p5 }
  0x31   :  { %245 = shalt.err (!%p242_p9)
}
  0x32   :  { %46 = dma.hbm_to_vmem [thread:$0]  %s355_s2, 256, %s41_s11, [#allocation8], %s264_s24, %s264_s24, %s265_s25  }
  0x33   :  { %256 = dma.done.wait [#allocation5], 256  }
  0x34   :  { %257 = vsyncadd [#allocation5], 4294967040 }
  0x35   :  { %258 = dma.done.wait [#allocation8], 512  }
  0x36   :  { %259 = vsyncadd [#allocation8], 4294966784  ;;  %v267_v0 = vmov 0.0   ;;  %v62_v1 = vld [vmem:[#allocation4] sm:$0xff]  ;;  %v63_v2 = vld [vmem:[#allocation4 + $0x8] sm:$0xf] }
  0x37   :  { %60 = vst [vmem:[#allocation2] sm:$0x1] %v267_v0  ;;  %61 = vst [vmem:[#allocation3] sm:$0x1] %v267_v0  ;;  %v64_v3 = vld [vmem:[#allocation7] sm:$0xff]  ;;  %v91_v6 = vld [vmem:[#allocation9] sm:$0xff] }
  0x38   :  { %v65_v4 = vld [vmem:[#allocation7 + $0x8] sm:$0xf]  ;;  %v66_v5 = vsub.f32 %v64_v3, %v62_v1  ;;  %v92_v7 = vld [vmem:[#allocation9 + $0x8] sm:$0xf]  ;;  %v93_v9 = vsub.f32 %v91_v6, %v64_v3  ;;  %vm70_vm0 = vcmask 1043456   ;;  %vm128_vm1 = vcmask 1040384  }
  0x39   :  { %v67_v8 = vsub.f32 %v65_v4, %v63_v2  ;;  %v94_v10 = vsub.f32 %v92_v7, %v65_v4  ;;  %s246_s24 = scalar_lea.hbm %s356_s3, 16 }
  0x3a   :  { %v68_v11 = vand.u32 2147483647, %v66_v5  ;;  %v80_v12 = vmul.f32 %v66_v5, %v66_v5  ;;  %v95_v14 = vand.u32 2147483647, %v93_v9  ;;  %v106_v17 = vmul.f32 %v93_v9, %v93_v9  ;;  %p247_p10 = scmp.ne.s32.totalorder %s356_s3, %s246_s24  ;;  %p250_p11 = scmp.lt.u32.totalorder %s246_s24, %s356_s3 }
  0x3b   :  { %v69_v13 = vand.u32 2147483647, %v67_v8  ;;  %v96_v15 = vand.u32 2147483647, %v94_v10  ;;  %v81_v16 = vmul.f32 %v67_v8, %v67_v8  ;;  %v107_v18 = vmul.f32 %v94_v10, %v94_v10 }
  0x3c   :  { %p252_p12 = pnand %p250_p11, %p247_p10 }
  0x3d   :  { %v71_v19 = vsel %vm70_vm0, %v69_v13, 0.0  ;;  %v97_v20 = vsel %vm70_vm0, %v96_v15, 0.0  ;;  %v82_v21 = vsel %vm70_vm0, %v81_v16, 0.0  ;;  %v108_v25 = vsel %vm70_vm0, %v107_v18, 0.0 }
  0x3e   :  { %v72_v22 = vadd.f32 %v71_v19, %v68_v11  ;;  %v98_v23 = vadd.f32 %v97_v20, %v95_v14  ;;  %v83_v24 = vadd.f32 %v82_v21, %v80_v12  ;;  %v109_v26 = vadd.f32 %v108_v25, %v106_v17  ;;  %v118_v49 = vld [vmem:[#allocation2] sm:$0x1]  ;;  %v121_v55 = vld [vmem:[#allocation3] sm:$0x1] }
  0x40   :  { %v73_v27 = vrot.slane %v72_v22, 4  ;;  %v99_v28 = vrot.slane %v98_v23, 4  ;;  %v84_v29 = vrot.slane %v83_v24, 4  ;;  %v110_v30 = vrot.slane %v109_v26, 4 }
  0x42   :  { %v74_v31 = vadd.f32 %v73_v27, %v72_v22  ;;  %v100_v32 = vadd.f32 %v99_v28, %v98_v23  ;;  %v85_v33 = vadd.f32 %v84_v29, %v83_v24  ;;  %v111_v34 = vadd.f32 %v110_v30, %v109_v26 }
  0x44   :  { %v75_v35 = vrot.slane %v74_v31, 2  ;;  %v101_v36 = vrot.slane %v100_v32, 2  ;;  %v86_v37 = vrot.slane %v85_v33, 2  ;;  %v112_v38 = vrot.slane %v111_v34, 2 }
  0x46   :  { %v76_v39 = vadd.f32 %v75_v35, %v74_v31  ;;  %v102_v40 = vadd.f32 %v101_v36, %v100_v32  ;;  %v87_v41 = vadd.f32 %v86_v37, %v85_v33  ;;  %v113_v42 = vadd.f32 %v112_v38, %v111_v34 }
  0x48   :  { %v77_v43 = vrot.slane %v76_v39, 1  ;;  %v103_v44 = vrot.slane %v102_v40, 1  ;;  %v88_v45 = vrot.slane %v87_v41, 1  ;;  %v114_v46 = vrot.slane %v113_v42, 1 }
  0x4a   :  { %v78_v47 = vadd.f32 %v77_v43, %v76_v39  ;;  %v104_v48 = vadd.f32 %v103_v44, %v102_v40  ;;  %v89_v50 = vadd.f32 %v88_v45, %v87_v41  ;;  %v115_v51 = vadd.f32 %v114_v46, %v113_v42 }
  0x4c   :  { %v105_v52 = vadd.f32 %v104_v48, %v78_v47  ;;  %v116_v53 = vmul.f32 2.0, %v115_v51 }
  0x4e   :  { %v119_v54 = vadd.f32 %v118_v49, %v105_v52  ;;  %v117_v56 = vadd.f32 %v116_v53, %v89_v50 }
  0x50   :  { %120 = vst [vmem:[#allocation2] sm:$0x1] %v119_v54  ;;  %v122_v57 = vadd.f32 %v121_v55, %v117_v56 }
  0x52   :  { %123 = vst [vmem:[#allocation3] sm:$0x1] %v122_v57 }
  0x57   :  { %v127_v58 = vld [vmem:[#allocation2] sm:$0x1] }
  0x58   :  { %v129_v59 = vsel %vm128_vm1, %v127_v58, 0.0 }
  0x59   :  { %130 = vadd.xlane.f32.xlu0 %v129_v59  ;;  %v141_v60 = vld [vmem:[#allocation3] sm:$0x1] }
  0x5a   :  { %v142_v61 = vsel %vm128_vm1, %v141_v60, 0.0 }
  0x5d   :  { %143 = vadd.xlane.f32.xlu0 %v142_v61 }
  0xe6   :  { %v131_v62 = vpop.xlane.xlu0 %130 }
  0xe7   :  { %v132_v63 = vrot.slane %v131_v62, 4 }
  0xe9   :  { %v133_v0 = vadd.f32 %v132_v63, %v131_v62 }
  0xea   :  { %v144_v1 = vpop.xlane.xlu0 %143 }
  0xeb   :  { %v134_v2 = vrot.slane %v133_v0, 2  ;;  %v145_v3 = vrot.slane %v144_v1, 4 }
  0xed   :  { %v146_v4 = vadd.f32 %v145_v3, %v144_v1  ;;  %v135_v5 = vadd.f32 %v134_v2, %v133_v0 }
  0xef   :  { %v147_v6 = vrot.slane %v146_v4, 2  ;;  %v136_v7 = vrot.slane %v135_v5, 1 }
  0xf1   :  { %v148_v8 = vadd.f32 %v147_v6, %v146_v4  ;;  %v137_v9 = vadd.f32 %v136_v7, %v135_v5 }
  0xf3   :  { %169 = vpush %v137_v9  ;;  %v149_v10 = vrot.slane %v148_v8, 1 }
  0xf5   :  { %v150_v11 = vadd.f32 %v149_v10, %v148_v8 }
  0xf7   :  { %171 = vpush %v150_v11 }
 0x124   :  { %s170_s2 = spop %169 }
 0x125   :  { %140 = sst [smem:[#allocation10]] %s170_s2 }
 0x128   :  { %s172_s21 = spop %171 }
 0x129   :  { %153 = sst [smem:[#allocation10 + $0x1]] %s172_s21 }
 0x12a   :  { %255 = shalt.err (!%p252_p12)
}
 0x12b   :  { %s268_s29 = smov [#allocation10]  }
 0x12c   :  { %161 = dma.smem_to_hbm %s268_s29, 16, %s356_s3, [#allocation6]  }
 0x12d   :  { %260 = dma.done.wait [#allocation6], 16  }
 0x12e   :  { %261 = vsyncadd [#allocation6], 4294967280 }
 0x12f   :  { %165 = sfence }
 0x130   :  { %166 = vsyncpa [#allocation5], 1 }
 0x131   :  { %167 = vsyncpa [#allocation8], 1 }
 0x132   :  { %168 = vsyncpa [#allocation6], 1 }

</bundles_post_ra>
